<compile_context>
chip_gen: v6e
topology: v6e:2x2x1
jax: 0.10.0
libtpu: 0.0.40
codegen_flags: <defaults>
</compile_context>

<pallas_src>
import functools
from typing import NamedTuple, Optional

import jax
import jax.numpy as jnp
from jax.experimental import pallas as pl
from jax.experimental.pallas import tpu as pltpu


def _round_up(x: int, m: int) -> int:
    return ((x + m - 1) // m) * m


def _vmem_capacity_bytes() -> int:
    """Physical VMEM per TensorCore; conservative fallback if the query fails."""
    try:
        return int(pltpu.get_tpu_info().vmem_capacity_bytes)
    except Exception:
        return 64 * 1024 * 1024  # v7x per-core size; safe lower bound for all gens


class PreparedParams(NamedTuple):
    w0: jax.Array            # (d_in_p, d_h_p)        compute dtype
    b0: jax.Array            # (1, d_h_p)             f32
    wr: Optional[jax.Array]  # (L-1, d_h_p, d_h_p)    compute dtype, or None
    br: Optional[jax.Array]  # (L-1, 1, d_h_p)        f32, or None


def prepare_predictor_params(params, *, compute_dtype=jnp.bfloat16):
    """One-time zero-padding / stacking of the weights (hoisted out of forward).

    params: list of (W, b) with W in [in_features, out_features] layout.
    """
    num_layers = len(params)
    input_dim, output_dim = params[0][0].shape
    d_in_p = _round_up(input_dim, 128)
    d_h_p = _round_up(output_dim, 128)

    w0, b0 = params[0]
    w0_p = (jnp.zeros((d_in_p, d_h_p), compute_dtype)
            .at[:input_dim, :output_dim].set(w0.astype(compute_dtype)))
    b0_p = (jnp.zeros((1, d_h_p), jnp.float32)
            .at[0, :output_dim].set(b0.astype(jnp.float32)))

    wr = br = None
    if num_layers > 1:
        wr = jnp.stack([
            jnp.zeros((d_h_p, d_h_p), compute_dtype)
            .at[:output_dim, :output_dim].set(params[l][0].astype(compute_dtype))
            for l in range(1, num_layers)
        ])
        br = jnp.stack([
            jnp.zeros((1, d_h_p), jnp.float32)
            .at[0, :output_dim].set(params[l][1].astype(jnp.float32))
            for l in range(1, num_layers)
        ])
    return PreparedParams(w0_p, b0_p, wr, br)


def _mlp_kernel(x_ref, w0_ref, b0_ref, *rest, num_layers: int):
    """Fused MLP over one batch tile.

    x_ref : (TM, D_in_p)               activation tile (compute dtype)
    w0_ref: (D_in_p, D_h_p)            first-layer weight (compute dtype)
    b0_ref: (1, D_h_p)                 first-layer bias (f32)
    rest  : [wr_ref (L-1, D_h_p, D_h_p), br_ref (L-1, 1, D_h_p)]  (if L > 1)
            + o_ref (TM, D_h_p)
    """
    o_ref = rest[-1]

    # Layer 0: x @ W0 + b0, f32 accumulation on the MXU.
    y = jnp.dot(x_ref[...], w0_ref[...], preferred_element_type=jnp.float32)
    y = y + b0_ref[...]

    if num_layers > 1:
        wr_ref, br_ref = rest[0], rest[1]
        y = jnp.maximum(y, 0.0)  # ReLU after layer 0 (there are more layers)
        for l in range(num_layers - 1):  # statically unrolled (small/static L)
            h = y.astype(wr_ref.dtype)   # cast operands; accumulation stays f32
            y = jnp.dot(h, wr_ref[l], preferred_element_type=jnp.float32)
            y = y + br_ref[l]
            if l < num_layers - 2:
                y = jnp.maximum(y, 0.0)

    o_ref[...] = y.astype(o_ref.dtype)


@functools.partial(
    jax.jit,
    static_argnames=("input_dim", "output_dim", "num_layers", "tm_max"))
def predictor_forward(prepared: PreparedParams, embedding, *, input_dim,
                      output_dim, num_layers, tm_max: int = 1024):
    """Fused Pallas forward pass of Predictor (prepared weights, jitted)."""
    B = embedding.shape[0]
    compute_dtype = prepared.w0.dtype
    d_in_p, d_h_p = prepared.w0.shape
    cdt_size = jnp.dtype(compute_dtype).itemsize
    out_dtype = embedding.dtype
    out_size = jnp.dtype(out_dtype).itemsize

    # ---- VMEM budgeting (generation-aware: 64 MiB/core on v7x, 128 MiB else) --
    vmem_cap = _vmem_capacity_bytes()
    # Weights/biases are single-buffered (Buffered(1)) and fully resident.
    weight_bytes = (d_in_p * d_h_p + (num_layers - 1) * d_h_p * d_h_p) * cdt_size
    bias_bytes = num_layers * d_h_p * 4
    if weight_bytes + bias_bytes > vmem_cap // 3:
        # TODO(synk): for large MLPs, tile the hidden dim with an extra grid axis
        # (or pltpu.emit_pipeline over weight tiles) instead of keeping every
        # layer's weights VMEM-resident.
        raise ValueError(
            "Predictor weights too large for the VMEM-resident fast path "
            f"({weight_bytes + bias_bytes} bytes vs VMEM {vmem_cap} bytes)")

    # Per-row VMEM: double-buffered x/out tiles + ~3x (tm, d_h_p) f32 live temps.
    per_row = 2 * d_in_p * cdt_size + 2 * d_h_p * out_size + 3 * d_h_p * 4
    budget = int(0.6 * vmem_cap) - (weight_bytes + bias_bytes)
    tm_fit = max(8, (budget // per_row) // 8 * 8)

    # Megacore: keep >= 2 grid steps whenever B > 8 so the "parallel" batch axis
    # can be sharded across both TensorCores on v7x (no-op on v5e/v6e).
    tm_mega = _round_up(max(-(-B // 2), 1), 8)
    tm = max(8, min(tm_max, tm_fit, tm_mega, _round_up(B, 8)))
    grid_b = pl.cdiv(B, tm)
    b_pad = grid_b * tm

    # Zero-padded input slab (one fused pad op under jit). Zero padding keeps
    # padded lanes at exactly 0 through ReLU and every subsequent layer.
    x_p = jnp.pad(embedding.astype(compute_dtype),
                  ((0, b_pad - B), (0, d_in_p - input_dim)))

    resident = functools.partial(pl.BlockSpec, pipeline_mode=pl.Buffered(1))
    inputs = [x_p, prepared.w0, prepared.b0]
    in_specs = [
        pl.BlockSpec((tm, d_in_p), lambda i: (i, 0)),   # streamed per batch tile
        resident((d_in_p, d_h_p), lambda i: (0, 0)),    # VMEM-resident, 1 buffer
        resident((1, d_h_p), lambda i: (0, 0)),
    ]
    if num_layers > 1:
        inputs += [prepared.wr, prepared.br]
        in_specs += [
            resident((num_layers - 1, d_h_p, d_h_p), lambda i: (0, 0, 0)),
            resident((num_layers - 1, 1, d_h_p), lambda i: (0, 0, 0)),
        ]

    flops = 2 * b_pad * (d_in_p * d_h_p + (num_layers - 1) * d_h_p * d_h_p)
    bytes_accessed = (b_pad * d_in_p * cdt_size + weight_bytes + bias_bytes
                      + b_pad * d_h_p * out_size)
    est_vmem = (weight_bytes + bias_bytes
                + 2 * tm * d_in_p * cdt_size
                + 2 * tm * d_h_p * out_size
                + 4 * tm * d_h_p * 4)
    vmem_limit = int(min(vmem_cap, est_vmem + (16 << 20)))

    out_padded = pl.pallas_call(
        functools.partial(_mlp_kernel, num_layers=num_layers),
        out_shape=jax.ShapeDtypeStruct((b_pad, d_h_p), out_dtype),
        grid=(grid_b,),
        in_specs=in_specs,
        out_specs=pl.BlockSpec((tm, d_h_p), lambda i: (i, 0)),
        compiler_params=pltpu.CompilerParams(
            dimension_semantics=("parallel",),
            vmem_limit_bytes=vmem_limit,
        ),
        cost_estimate=pl.CostEstimate(
            flops=flops, transcendentals=0, bytes_accessed=bytes_accessed),
    )(*inputs)

    return out_padded[:B, :output_dim]


def init_predictor_params(key, input_dim, output_dim, num_layers):
    """Deterministic parameter init matching the module's shapes.

    Returns a list of (W, b) with W in [in_features, out_features] layout.
    """
    params = []
    dims = [input_dim] + [output_dim] * num_layers
    for layer in range(num_layers):
        key, kw, kb = jax.random.split(key, 3)
        fan_in = dims[layer]
        fan_out = dims[layer + 1]
        bound = 1.0 / jnp.sqrt(fan_in)
        # PyTorch Linear weight is (out, in); we store the transpose (in, out).
        w = jax.random.uniform(
            kw, (fan_in, fan_out), jnp.float32, minval=-bound, maxval=bound)
        b = jax.random.uniform(
            kb, (fan_out,), jnp.float32, minval=-bound, maxval=bound)
        params.append((w, b))
    return params


def predictor_reference(params, embedding):
    """Pure-JAX reference for correctness checking."""
    num_layers = len(params)
    h = embedding
    for layer in range(num_layers - 1):
        w, b = params[layer]
        h = jnp.maximum(h @ w + b, 0.0)
    w, b = params[num_layers - 1]
    return h @ w + b


if __name__ == "__main__":
    key = jax.random.PRNGKey(0)

    # Test 1: small shapes consistent with the module; default bf16 operands
    # (f32 accumulation) and exact f32 opt-in mode.
    k_params, k_x, key = jax.random.split(key, 3)
    batch, input_dim, output_dim, num_layers = 8, 32, 32, 3
    params = init_predictor_params(k_params, input_dim, output_dim, num_layers)
    x = jax.random.normal(k_x, (batch, input_dim), jnp.float32)
    ref = predictor_reference(params, x)

    prepared_bf16 = prepare_predictor_params(params, compute_dtype=jnp.bfloat16)
    out = jax.block_until_ready(
        predictor_forward(prepared_bf16, x, input_dim=input_dim,
                          output_dim=output_dim, num_layers=num_layers))
    assert out.shape == (batch, output_dim)
    assert jnp.allclose(out, ref, atol=5e-2, rtol=5e-2), "bf16 path mismatch"

    prepared_f32 = prepare_predictor_params(params, compute_dtype=jnp.float32)
    out_f32 = jax.block_until_ready(
        predictor_forward(prepared_f32, x, input_dim=input_dim,
                          output_dim=output_dim, num_layers=num_layers))
    assert jnp.allclose(out_f32, ref, atol=1e-5, rtol=1e-5), "f32 path mismatch"

    # Test 2: ragged batch + input_dim != output_dim (exercises padding, batch
    # tiling with >= 2 grid steps, and the megacore/VMEM sizing path).
    k_params2, k_x2, key = jax.random.split(key, 3)
    batch2, input_dim2, output_dim2, num_layers2 = 300, 96, 48, 2
    params2 = init_predictor_params(k_params2, input_dim2, output_dim2, num_layers2)
    x2 = jax.random.normal(k_x2, (batch2, input_dim2), jnp.float32)

    prepared2 = prepare_predictor_params(params2, compute_dtype=jnp.float32)
    out2 = jax.block_until_ready(
        predictor_forward(prepared2, x2, input_dim=input_dim2,
                          output_dim=output_dim2, num_layers=num_layers2))
    ref2 = predictor_reference(params2, x2)
    assert out2.shape == (batch2, output_dim2)
    assert jnp.allclose(out2, ref2, atol=1e-5, rtol=1e-5)

    print("KERNEL_OK")
</pallas_src>

<mosaic_0001>
module attributes {stable_mosaic.version = 11 : i64} {
  func.func @_mlp_kernel(%arg0: i32, %arg1: memref<8x128xbf16, #tpu.memory_space<vmem>>, %arg2: memref<128x128xbf16, #tpu.memory_space<vmem>>, %arg3: memref<1x128xf32, #tpu.memory_space<vmem>>, %arg4: memref<2x128x128xbf16, #tpu.memory_space<vmem>>, %arg5: memref<2x1x128xf32, #tpu.memory_space<vmem>>, %arg6: memref<8x128xf32, #tpu.memory_space<vmem>>) attributes {dimension_semantics = [#tpu.dimension_semantics<parallel>], iteration_bounds = array<i64: 1>, scalar_prefetch = 0 : i64, scratch_operands = 0 : i64, tpu.core_type = #tpu.core_type<tc>, window_params = [{transform_indices = @transform_0, window_bounds = array<i64: 8, 128>}, {pipeline_mode = #tpu.pipeline_mode<synchronous>, transform_indices = @transform_1, window_bounds = array<i64: 128, 128>}, {pipeline_mode = #tpu.pipeline_mode<synchronous>, transform_indices = @transform_2, window_bounds = array<i64: 1, 128>}, {pipeline_mode = #tpu.pipeline_mode<synchronous>, transform_indices = @transform_3, window_bounds = array<i64: 2, 128, 128>}, {pipeline_mode = #tpu.pipeline_mode<synchronous>, transform_indices = @transform_4, window_bounds = array<i64: 2, 1, 128>}, {transform_indices = @transform_5, window_bounds = array<i64: 8, 128>}]} {
    %c0 = arith.constant 0 : index
    %c0_0 = arith.constant 0 : index
    %0 = vector.load %arg1[%c0, %c0_0] : memref<8x128xbf16, #tpu.memory_space<vmem>>, vector<8x128xbf16>
    %c0_1 = arith.constant 0 : index
    %c0_2 = arith.constant 0 : index
    %1 = vector.load %arg2[%c0_1, %c0_2] : memref<128x128xbf16, #tpu.memory_space<vmem>>, vector<128x128xbf16>
    %cst = arith.constant dense<0.000000e+00> : vector<8x128xf32>
    %2 = tpu.matmul %0, %1, %cst {dimension_numbers = #tpu.dot_dimension_numbers<[1], [0], [0], [1], [0, 0, 1, 1], [], []>} : vector<8x128xbf16>, vector<128x128xbf16>, vector<8x128xf32> -> vector<8x128xf32>
    %c0_3 = arith.constant 0 : index
    %c0_4 = arith.constant 0 : index
    %3 = vector.load %arg3[%c0_3, %c0_4] : memref<1x128xf32, #tpu.memory_space<vmem>>, vector<1x128xf32>
    %4 = vector.broadcast %3 : vector<1x128xf32> to vector<8x128xf32>
    %5 = arith.addf %2, %4 : vector<8x128xf32>
    %cst_5 = arith.constant 0.000000e+00 : f32
    %6 = vector.broadcast %cst_5 : f32 to vector<8x128xf32>
    %7 = arith.maximumf %5, %6 : vector<8x128xf32>
    %8 = arith.truncf %7 : vector<8x128xf32> to vector<8x128xbf16>
    %c0_6 = arith.constant 0 : index
    %c0_7 = arith.constant 0 : index
    %c0_8 = arith.constant 0 : index
    %9 = vector.load %arg4[%c0_6, %c0_7, %c0_8] : memref<2x128x128xbf16, #tpu.memory_space<vmem>>, vector<1x128x128xbf16>
    %10 = vector.shape_cast %9 : vector<1x128x128xbf16> to vector<128x128xbf16>
    %cst_9 = arith.constant dense<0.000000e+00> : vector<8x128xf32>
    %11 = tpu.matmul %8, %10, %cst_9 {dimension_numbers = #tpu.dot_dimension_numbers<[1], [0], [0], [1], [0, 0, 1, 1], [], []>} : vector<8x128xbf16>, vector<128x128xbf16>, vector<8x128xf32> -> vector<8x128xf32>
    %c0_10 = arith.constant 0 : index
    %c0_11 = arith.constant 0 : index
    %c0_12 = arith.constant 0 : index
    %12 = vector.load %arg5[%c0_10, %c0_11, %c0_12] : memref<2x1x128xf32, #tpu.memory_space<vmem>>, vector<1x1x128xf32>
    %13 = vector.shape_cast %12 : vector<1x1x128xf32> to vector<1x128xf32>
    %14 = vector.broadcast %13 : vector<1x128xf32> to vector<8x128xf32>
    %15 = arith.addf %11, %14 : vector<8x128xf32>
    %cst_13 = arith.constant 0.000000e+00 : f32
    %16 = vector.broadcast %cst_13 : f32 to vector<8x128xf32>
    %17 = arith.maximumf %15, %16 : vector<8x128xf32>
    %18 = arith.truncf %17 : vector<8x128xf32> to vector<8x128xbf16>
    %c1 = arith.constant 1 : index
    %c0_14 = arith.constant 0 : index
    %c0_15 = arith.constant 0 : index
    %19 = vector.load %arg4[%c1, %c0_14, %c0_15] : memref<2x128x128xbf16, #tpu.memory_space<vmem>>, vector<1x128x128xbf16>
    %20 = vector.shape_cast %19 : vector<1x128x128xbf16> to vector<128x128xbf16>
    %cst_16 = arith.constant dense<0.000000e+00> : vector<8x128xf32>
    %21 = tpu.matmul %18, %20, %cst_16 {dimension_numbers = #tpu.dot_dimension_numbers<[1], [0], [0], [1], [0, 0, 1, 1], [], []>} : vector<8x128xbf16>, vector<128x128xbf16>, vector<8x128xf32> -> vector<8x128xf32>
    %c1_17 = arith.constant 1 : index
    %c0_18 = arith.constant 0 : index
    %c0_19 = arith.constant 0 : index
    %22 = vector.load %arg5[%c1_17, %c0_18, %c0_19] : memref<2x1x128xf32, #tpu.memory_space<vmem>>, vector<1x1x128xf32>
    %23 = vector.shape_cast %22 : vector<1x1x128xf32> to vector<1x128xf32>
    %24 = vector.broadcast %23 : vector<1x128xf32> to vector<8x128xf32>
    %25 = arith.addf %21, %24 : vector<8x128xf32>
    %c0_20 = arith.constant 0 : index
    %c0_21 = arith.constant 0 : index
    %26 = vector.load %arg6[%c0_20, %c0_21] : memref<8x128xf32, #tpu.memory_space<vmem>>, vector<8x128xf32>
    tpu.vector_store %arg6[%c0_20, %c0_21], %25 {strides = array<i32>} : memref<8x128xf32, #tpu.memory_space<vmem>>, vector<8x128xf32>,
    return
  }
  func.func @transform_0(%arg0: i32) -> (i32, i32) {
    %c0_i32 = arith.constant 0 : i32
    %c0_i32_0 = arith.constant 0 : i32
    return %arg0, %c0_i32 : i32, i32
  }
  func.func @transform_1(%arg0: i32) -> (i32, i32) {
    %c0_i32 = arith.constant 0 : i32
    %c0_i32_0 = arith.constant 0 : i32
    %c0_i32_1 = arith.constant 0 : i32
    return %c0_i32, %c0_i32_0 : i32, i32
  }
  func.func @transform_2(%arg0: i32) -> (i32, i32) {
    %c0_i32 = arith.constant 0 : i32
    %c0_i32_0 = arith.constant 0 : i32
    %c0_i32_1 = arith.constant 0 : i32
    return %c0_i32, %c0_i32_0 : i32, i32
  }
  func.func @transform_3(%arg0: i32) -> (i32, i32, i32) {
    %c0_i32 = arith.constant 0 : i32
    %c0_i32_0 = arith.constant 0 : i32
    %c0_i32_1 = arith.constant 0 : i32
    %c0_i32_2 = arith.constant 0 : i32
    return %c0_i32, %c0_i32_0, %c0_i32_1 : i32, i32, i32
  }
  func.func @transform_4(%arg0: i32) -> (i32, i32, i32) {
    %c0_i32 = arith.constant 0 : i32
    %c0_i32_0 = arith.constant 0 : i32
    %c0_i32_1 = arith.constant 0 : i32
    %c0_i32_2 = arith.constant 0 : i32
    return %c0_i32, %c0_i32_0, %c0_i32_1 : i32, i32, i32
  }
  func.func @transform_5(%arg0: i32) -> (i32, i32) {
    %c0_i32 = arith.constant 0 : i32
    %c0_i32_0 = arith.constant 0 : i32
    return %arg0, %c0_i32 : i32, i32
  }
}

</mosaic_0001>

<bundles_post_ra>
// kernel: predictor_forward.1
= control target key start
LH: loop header
LB: loop body
LE: loop exit
PB: predicated region body
PF: predicated region fallthrough
CT: control target
= control target key end

     0   :  { %10 = vsyncpa [#allocation3], 0  ;;  %s707_s0 = inlined_call_operand.vmem [shape: bf16[8,128], index: 0, kind: input, shape index: {}]   ;;  %s708_s1 = inlined_call_operand.hbm [shape: bf16[128,128], index: 1, kind: input, shape index: {}]   ;;  %s709_s2 = inlined_call_operand.vmem [shape: f32[1,128], index: 2, kind: input, shape index: {}]   ;;  %s710_s3 = inlined_call_operand.hbm [shape: bf16[2,128,128], index: 3, kind: input, shape index: {}]   ;;  %s711_s4 = inlined_call_operand.vmem [shape: f32[2,1,128], index: 4, kind: input, shape index: {}]   ;;  %s712_s5 = inlined_call_operand.hbm [shape: f32[8,128], index: 5, kind: output, shape index: {}]  }
   0x1   :  { %11 = vsyncpa [#allocation6], 0 }
   0x2   :  { %12 = vsyncpa [#allocation4], 0  ;;  %s619_s18 = smov [#allocation2]  }
   0x3   :  { %s20_s19 = sshll.u32 %s619_s18, 4  ;;  %s21_s19 = int_to_ptr.vmem [resolvable:$true] %s20_s19 }
   0x4   :  { %s561_s20 = scalar_lea.vmem %s21_s19, 1024  ;;  %p566_p1 = scmp.lt.s32.totalorder %s21_s19, %s21_s19 }
   0x5   :  { %p562_p0 = scmp.ne.s32.totalorder %s21_s19, %s561_s20  ;;  %p567_p2 = scmp.lt.s32.totalorder %s561_s20, %s561_s20 }
   0x7   :  { %p568_p3 = por %p567_p2, %p566_p1 }
   0x9   :  { %p569_p4 = pnand %p568_p3, %p562_p0 }
   0xb   :  { %572 = shalt.err (!%p569_p4)
}
   0xc   :  { %s620_s21 = smov 64   ;;  %s621_s22 = smov 4  }
   0xd   :  { %26 = dma.hbm_to_vmem [thread:$0]  %s708_s1, 1024, %s21_s19, [#allocation3], %s620_s21, %s620_s21, %s621_s22  }
   0xe   :  { %s622_s25 = smov [#allocation5]  }
   0xf   :  { %s34_s26 = sshll.u32 %s622_s25, 4  ;;  %s35_s26 = int_to_ptr.vmem [resolvable:$true] %s34_s26 }
  0x10   :  { %s581_s27 = scalar_lea.vmem %s35_s26, 2048  ;;  %p586_p6 = scmp.lt.s32.totalorder %s35_s26, %s35_s26 }
  0x11   :  { %p582_p5 = scmp.ne.s32.totalorder %s35_s26, %s581_s27  ;;  %p587_p7 = scmp.lt.s32.totalorder %s581_s27, %s581_s27 }
  0x13   :  { %p588_p8 = por %p587_p7, %p586_p6 }
  0x15   :  { %p589_p9 = pnand %p588_p8, %p582_p5 }
  0x17   :  { %592 = shalt.err (!%p589_p9)
}
  0x18   :  { %40 = dma.hbm_to_vmem [thread:$0]  %s710_s3, 2048, %s35_s26, [#allocation6], %s620_s21, %s620_s21, %s621_s22  }
  0x19   :  { %613 = dma.done.wait [#allocation3], 1024  }
  0x1a   :  { %614 = vsyncadd [#allocation3], 4294966272 }
  0x1b   :  { %615 = dma.done.wait [#allocation6], 2048  }
  0x1c   :  { %616 = vsyncadd [#allocation6], 4294965248  ;;  %v623_v0 = vmov 0.0   ;;  %vm624_vm0 = vmmov 0   ;;  %v529_v1 = vld [vmem:[#allocation2 + $0x38] sm:$0xff]   ;;  %v530_v2 = vld [vmem:[#allocation2 + $0x30] sm:$0xff]  }
  0x1d   :  { %462 = vmatprep.subr.bf16.mxu0 %v623_v0  ;;  %478 = vmatprep.mubr.msk.bf16.mxu0 %vm624_vm0, %v623_v0  ;;  %v531_v3 = vld [vmem:[#allocation2 + $0x28] sm:$0xff]   ;;  %v537_v4 = vld [vmem:[#allocation5 + $0x38] sm:$0xff]   ;;  %v532_v5 = vld [vmem:[#allocation2 + $0x20] sm:$0xff]   ;;  %s625_s9 = smov [#allocation7]  }
  0x1e   :  { %482 = vmatprep.subr.bf16.mxu1 %v623_v0  ;;  %498 = vmatprep.mubr.msk.bf16.mxu1 %vm624_vm0, %v623_v0  ;;  %v538_v6 = vld [vmem:[#allocation5 + $0x30] sm:$0xff]   ;;  %v533_v7 = vld [vmem:[#allocation2 + $0x18] sm:$0xff]   ;;  %v539_v8 = vld [vmem:[#allocation5 + $0x28] sm:$0xff]   ;;  %s397_s10 = sshll.u32 %s625_s9, 4  ;;  %s398_s10 = int_to_ptr.vmem [resolvable:$true] %s397_s10 }
  0x1f   :  { %463 = vmatpush3.bf16.msra.mxu0 %v529_v1  ;;  %483 = vmatpush3.bf16.msra.mxu1 %v537_v4  ;;  %v534_v9 = vld [vmem:[#allocation2 + $0x10] sm:$0xff]   ;;  %v540_v10 = vld [vmem:[#allocation5 + $0x20] sm:$0xff]   ;;  %v535_v11 = vld [vmem:[#allocation2 + $0x8] sm:$0xff]   ;;  %s593_s11 = scalar_lea.vmem %s398_s10, 128  ;;  %p598_p11 = scmp.lt.s32.totalorder %s398_s10, %s398_s10 }
  0x20   :  { %464 = vmatprep.subr.bf16.mxu0 %v623_v0  ;;  %484 = vmatprep.subr.bf16.mxu1 %v623_v0  ;;  %v541_v12 = vld [vmem:[#allocation5 + $0x18] sm:$0xff]   ;;  %v536_v13 = vld [vmem:[#allocation2] sm:$0xff]   ;;  %v542_v14 = vld [vmem:[#allocation5 + $0x10] sm:$0xff]   ;;  %p594_p10 = scmp.ne.s32.totalorder %s398_s10, %s593_s11  ;;  %p599_p12 = scmp.lt.s32.totalorder %s593_s11, %s593_s11 }
  0x21   :  { %v50_v15 = vld [vmem:[%s707_s0] sm:$0xf]  ;;  %v543_v16 = vld [vmem:[#allocation5 + $0x8] sm:$0xff]   ;;  %v545_v18 = vld [vmem:[#allocation5 + $0x78] sm:$0xff]  }
  0x22   :  { %v544_v17 = vld [vmem:[#allocation5] sm:$0xff]   ;;  %v546_v19 = vld [vmem:[#allocation5 + $0x70] sm:$0xff]   ;;  %v547_v20 = vld [vmem:[#allocation5 + $0x68] sm:$0xff]   ;;  %p600_p13 = por %p599_p12, %p598_p11 }
  0x23   :  { %465 = vmatpush3.bf16.msra.mxu0 %v530_v2  ;;  %485 = vmatpush3.bf16.msra.mxu1 %v538_v6  ;;  %v548_v21 = vld [vmem:[#allocation5 + $0x60] sm:$0xff]   ;;  %v549_v22 = vld [vmem:[#allocation5 + $0x58] sm:$0xff]   ;;  %v550_v23 = vld [vmem:[#allocation5 + $0x50] sm:$0xff]  }
  0x24   :  { %466 = vmatprep.subr.bf16.mxu0 %v623_v0  ;;  %486 = vmatprep.subr.bf16.mxu1 %v623_v0  ;;  %v407_v24 = vld [vmem:[%s709_s2] ss:$0 sm:$0xff]  ;;  %v551_v32 = vld [vmem:[#allocation5 + $0x48] sm:$0xff]   ;;  %v426_v42 = vld [vmem:[%s711_s4 + $0x1] ss:$0 sm:$0xff]  ;;  %p601_p0 = pnand %p600_p13, %p594_p10 }
  0x25   :  { %v552_v33 = vld [vmem:[#allocation5 + $0x40] sm:$0xff]  }
  0x26   :  { %v416_v34 = vld [vmem:[%s711_s4] ss:$0 sm:$0xff] }
  0x27   :  { %467 = vmatpush3.bf16.msra.mxu0 %v531_v3  ;;  %487 = vmatpush3.bf16.msra.mxu1 %v539_v8 }
  0x28   :  { %468 = vmatprep.subr.bf16.mxu0 %v623_v0  ;;  %488 = vmatprep.subr.bf16.mxu1 %v623_v0 }
  0x2b   :  { %469 = vmatpush3.bf16.msra.mxu0 %v532_v5  ;;  %489 = vmatpush3.bf16.msra.mxu1 %v540_v10 }
  0x2c   :  { %470 = vmatprep.subr.bf16.mxu0 %v623_v0  ;;  %490 = vmatprep.subr.bf16.mxu1 %v623_v0 }
  0x2f   :  { %471 = vmatpush3.bf16.msra.mxu0 %v533_v7  ;;  %491 = vmatpush3.bf16.msra.mxu1 %v541_v12 }
  0x30   :  { %472 = vmatprep.subr.bf16.mxu0 %v623_v0  ;;  %492 = vmatprep.subr.bf16.mxu1 %v623_v0 }
  0x33   :  { %473 = vmatpush3.bf16.msra.mxu0 %v534_v9  ;;  %493 = vmatpush3.bf16.msra.mxu1 %v542_v14 }
  0x34   :  { %474 = vmatprep.subr.bf16.mxu0 %v623_v0  ;;  %494 = vmatprep.subr.bf16.mxu1 %v623_v0 }
  0x37   :  { %475 = vmatpush3.bf16.msra.mxu0 %v535_v11  ;;  %495 = vmatpush3.bf16.msra.mxu1 %v543_v16 }
  0x38   :  { %476 = vmatprep.subr.bf16.mxu0 %v623_v0  ;;  %496 = vmatprep.subr.bf16.mxu1 %v623_v0 }
  0x3b   :  { %477 = vmatpush3.bf16.msra.mxu0 %v536_v13  ;;  %497 = vmatpush3.bf16.msra.mxu1 %v544_v17 }
  0x3c   :  { %502 = vmatprep.subr.bf16.mxu0 %v623_v0 }
  0x3e   :  { %479 = vmatmul.mubr.bf16.vlgmr.msra.gmra.mxu0 %v50_v15 }
  0x3f   :  { %518 = vmatprep.mubr.msk.bf16.mxu0 %vm624_vm0, %v623_v0  ;;  %503 = vmatpush3.bf16.msra.mxu0 %v545_v18 }
  0x40   :  { %504 = vmatprep.subr.bf16.mxu0 %v623_v0 }
  0x43   :  { %505 = vmatpush3.bf16.msra.mxu0 %v546_v19 }
  0x44   :  { %506 = vmatprep.subr.bf16.mxu0 %v623_v0 }
  0x47   :  { %507 = vmatpush3.bf16.msra.mxu0 %v547_v20 }
  0x48   :  { %508 = vmatprep.subr.bf16.mxu0 %v623_v0 }
  0x4b   :  { %509 = vmatpush3.bf16.msra.mxu0 %v548_v21 }
  0x4c   :  { %510 = vmatprep.subr.bf16.mxu0 %v623_v0 }
  0x4f   :  { %511 = vmatpush3.bf16.msra.mxu0 %v549_v22 }
  0x50   :  { %512 = vmatprep.subr.bf16.mxu0 %v623_v0 }
  0x53   :  { %513 = vmatpush3.bf16.msra.mxu0 %v550_v23 }
  0x54   :  { %514 = vmatprep.subr.bf16.mxu0 %v623_v0 }
  0x57   :  { %515 = vmatpush3.bf16.msra.mxu0 %v551_v32 }
  0x58   :  { %516 = vmatprep.subr.bf16.mxu0 %v623_v0 }
  0x5b   :  { %517 = vmatpush3.bf16.msra.mxu0 %v552_v33 }
  0xfe   :  { %v156_v25 = vpop.f32.mrf.mxu0 }
  0xff   :  { %v157_v26 = vadd.f32 %v407_v24, %v156_v25 }
 0x100   :  { %v480_v27 = vpop.f32.mrf.mxu0 }
 0x101   :  { %v162_v28 = vmax.f32 %v157_v26, 0.0 }
 0x102   :  { %v159_v29 = vpop.f32.mrf.mxu0 }
 0x103   :  { %v163_v30 = vpack.c.bf16 %v162_v28, %v162_v28 }
 0x104   :  { %v481_v31 = vpop.f32.mrf.mxu0 }
 0x105   :  { %499 = vmatmul.mubr.bf16.vlgmr.msra.gmra.mxu1 %v163_v30 }
 0x1c5   :  { %v269_v35 = vpop.f32.mrf.mxu1 }
 0x1c6   :  { %v270_v36 = vadd.f32 %v416_v34, %v269_v35 }
 0x1c7   :  { %v500_v37 = vpop.f32.mrf.mxu1 }
 0x1c8   :  { %v275_v38 = vmax.f32 %v270_v36, 0.0 }
 0x1c9   :  { %v272_v39 = vpop.f32.mrf.mxu1 }
 0x1ca   :  { %v276_v40 = vpack.c.bf16 %v275_v38, %v275_v38 }
 0x1cb   :  { %v501_v41 = vpop.f32.mrf.mxu1 }
 0x1cc   :  { %519 = vmatmul.mubr.bf16.vlgmr.msra.gmra.mxu0 %v276_v40 }
 0x28c   :  { %v384_v43 = vpop.f32.mrf.mxu0 }
 0x28d   :  { %v385_v44 = vadd.f32 %v426_v42, %v384_v43 }
 0x28e   :  { %v520_v45 = vpop.f32.mrf.mxu0 }
 0x28f   :  { %390 = vst [vmem:[#allocation7] sm:$0xff] %v385_v44 }
 0x290   :  { %v387_v46 = vpop.f32.mrf.mxu0 }
 0x291   :  { %604 = shalt.err (!%p601_p0)
}
 0x292   :  { %400 = dma.vmem_to_hbm [thread:$0]  %s398_s10, 128, %s712_s5, [#allocation4]   ;;  %v521_v47 = vpop.f32.mrf.mxu0 }
 0x293   :  { %617 = dma.done.wait [#allocation4], 128  }
 0x294   :  { %618 = vsyncadd [#allocation4], 4294967168 }
 0x295   :  { %404 = vsyncpa [#allocation3], 1 }
 0x296   :  { %405 = vsyncpa [#allocation6], 1 }
 0x297   :  { %406 = vsyncpa [#allocation4], 1 }

</bundles_post_ra>
